<compile_context>
chip_gen: v6e
topology: v6e:2x2x1
jax: 0.10.0
libtpu: 0.0.40
codegen_flags: <defaults>
</compile_context>

<pallas_src>
import functools
import math

import jax
import jax.numpy as jnp
from jax.experimental import pallas as pl
from jax.experimental.pallas import tpu as pltpu


# ---------------------------------------------------------------------------
# Kernel
# ---------------------------------------------------------------------------
def head_kernel(x_ref, wt_ref, shift_ref, o_ref, acc_ref, *, compute_dtype):
    # x_ref:     (TB, TK)  activation tile, native dtype (cast in-kernel)
    # wt_ref:    (TK, TF)  folded transposed-weight tile (compute_dtype)
    # shift_ref: (1, TF)   folded per-feature shift (f32)
    # o_ref:     (TB, TF)  output tile
    # acc_ref:   (TB, TF)  f32 accumulator scratch (persists across the K axis)
    k = pl.program_id(2)

    @pl.when(k == 0)
    def _init():
        acc_ref[...] = jnp.zeros_like(acc_ref)

    # Cast the activation tile in-kernel (VPU cast hides under the DMA) so the
    # wrapper never does a separate full-array cast pass over x.
    x_tile = x_ref[...].astype(compute_dtype)
    acc_ref[...] += jnp.dot(x_tile, wt_ref[...], preferred_element_type=jnp.float32)

    @pl.when(k == pl.num_programs(2) - 1)
    def _finalize():
        o_ref[...] = (acc_ref[...] + shift_ref[...]).astype(o_ref.dtype)


# ---------------------------------------------------------------------------
# Tiling helpers
# ---------------------------------------------------------------------------
def _round_up(n, m):
    return ((n + m - 1) // m) * m


def _cands(preferred, fallbacks):
    return (preferred,) + tuple(t for t in fallbacks if t < preferred)


def _choose_tile(dim, candidates, align):
    """Largest candidate that evenly divides `dim`; otherwise pad `dim` up to a
    tile multiple (never a full-extent fallback).  Returns (tile, padded_dim)."""
    for t in candidates:
        if t <= dim and dim % t == 0:
            return t, dim
    if dim >= candidates[0]:
        t = candidates[0]
    else:
        t = _round_up(dim, align)
    return t, _round_up(dim, t)


# ---------------------------------------------------------------------------
# Parameter fold (call ONCE at init time, not per forward)
# ---------------------------------------------------------------------------
def fold_head_params(wt, b, gamma, beta, running_mean, running_var, *,
                     eps=1e-5, compute_dtype=jnp.bfloat16):
    """Fold the Linear bias and eval-mode BatchNorm affine into the transposed
    weight plus a single per-feature shift."""
    scale = gamma.astype(jnp.float32) / jnp.sqrt(running_var.astype(jnp.float32) + eps)
    wt_folded = (wt.astype(jnp.float32) * scale[None, :]).astype(compute_dtype)
    shift_folded = (b.astype(jnp.float32) * scale
                    + beta.astype(jnp.float32)
                    - running_mean.astype(jnp.float32) * scale)
    return wt_folded, shift_folded.reshape(1, -1).astype(jnp.float32)


# ---------------------------------------------------------------------------
# Forward
# ---------------------------------------------------------------------------
def head_forward(x, wt_folded, shift_folded, *, out_dtype=None,
                 batch_tile=512, feature_tile=512, k_tile=1024,
                 compute_dtype=jnp.bfloat16):
    """x: (B, C) activations (any float dtype).  wt_folded: (C, F) folded
    transposed weight.  shift_folded: (1, F) folded per-feature shift (f32)."""
    B, C = x.shape
    Cw, F = wt_folded.shape
    assert Cw == C and shift_folded.shape == (1, F)
    out_dtype = x.dtype if out_dtype is None else jnp.dtype(out_dtype)

    # ---- Tile / padding selection --------------------------------------
    # batch: sublane-aligned (8); feature: lane-aligned (128); K: lane-aligned
    # (128) and bounded so VMEM is independent of C.
    TB, B_pad = _choose_tile(B, _cands(batch_tile, (256, 128, 64, 32, 16)), 8)
    TF, F_pad = _choose_tile(F, _cands(feature_tile, (256, 128)), 128)
    TK, C_pad = _choose_tile(C, _cands(k_tile, (512, 256, 128)), 128)

    ni = B_pad // TB
    nj = F_pad // TF
    nk = C_pad // TK

    # v7x has 2 TensorCores: make sure there are >= 2 parallel grid steps.
    if ni * nj == 1:
        if TF >= 256:
            TF //= 2
            nj = F_pad // TF
        elif TB >= 16:
            TB //= 2
            ni = B_pad // TB

    # ---- Pad operands up to tile multiples (no-op for aligned shapes) ---
    x_p = x
    if (B_pad, C_pad) != (B, C):
        x_p = jnp.pad(x, ((0, B_pad - B), (0, C_pad - C)))
    wt_p = wt_folded
    if (C_pad, F_pad) != (C, F):
        wt_p = jnp.pad(wt_folded, ((0, C_pad - C), (0, F_pad - F)))
    shift_p = shift_folded
    if F_pad != F:
        shift_p = jnp.pad(shift_folded, ((0, 0), (0, F_pad - F)))

    # ---- Grid order: keep the larger operand resident when nk == 1 ------
    swap = ni > nj  # more batch tiles than feature tiles -> j outer, i inner
    if swap:
        grid = (nj, ni, nk)
        x_map = lambda j, i, k: (i, k)
        w_map = lambda j, i, k: (k, j)
        s_map = lambda j, i, k: (0, j)
        o_map = lambda j, i, k: (i, j)
    else:
        grid = (ni, nj, nk)
        x_map = lambda i, j, k: (i, k)
        w_map = lambda i, j, k: (k, j)
        s_map = lambda i, j, k: (0, j)
        o_map = lambda i, j, k: (i, j)

    # ---- VMEM budget + cost estimate -------------------------------------
    itemsize_x = jnp.dtype(x.dtype).itemsize
    itemsize_w = jnp.dtype(compute_dtype).itemsize
    itemsize_o = jnp.dtype(out_dtype).itemsize
    vmem_needed = (
        2 * TB * TK * itemsize_x        # x, double-buffered (native dtype)
        + 2 * TK * TF * itemsize_w      # folded weight, double-buffered
        + 2 * TF * 4                    # shift
        + 2 * TB * TF * itemsize_o      # output, double-buffered
        + TB * TF * 4                   # f32 accumulator scratch
    )
    vmem_limit = int(min(max(2 * vmem_needed, 32 * 1024 * 1024), 64 * 1024 * 1024))

    if nk == 1:  # residency applies: only one operand is re-streamed
        w_reps = 1 if swap else ni
        x_reps = nj if swap else 1
    else:
        w_reps, x_reps = ni, nj
    cost = pl.CostEstimate(
        flops=2 * B_pad * C_pad * F_pad,
        transcendentals=0,
        bytes_accessed=(
            B_pad * C_pad * itemsize_x * x_reps
            + C_pad * F_pad * itemsize_w * w_reps
            + F_pad * 4 * w_reps
            + B_pad * F_pad * itemsize_o
        ),
    )

    out = pl.pallas_call(
        functools.partial(head_kernel, compute_dtype=compute_dtype),
        out_shape=jax.ShapeDtypeStruct((B_pad, F_pad), out_dtype),
        grid_spec=pltpu.PrefetchScalarGridSpec(
            num_scalar_prefetch=0,
            grid=grid,
            in_specs=[
                pl.BlockSpec((TB, TK), x_map),   # activation tile
                pl.BlockSpec((TK, TF), w_map),   # folded weight tile
                pl.BlockSpec((1, TF), s_map),    # folded shift tile
            ],
            out_specs=pl.BlockSpec((TB, TF), o_map),
            scratch_shapes=[pltpu.VMEM((TB, TF), jnp.float32)],
        ),
        compiler_params=pltpu.CompilerParams(
            dimension_semantics=("parallel", "parallel", "arbitrary"),
            vmem_limit_bytes=vmem_limit,
        ),
        cost_estimate=cost,
    )(x_p, wt_p, shift_p)

    if (B_pad, F_pad) != (B, F):
        out = out[:B, :F]
    return out


# ---------------------------------------------------------------------------
# Init + references
# ---------------------------------------------------------------------------
def init_head_params(key, in_channels, feature_size, dtype=jnp.float32):
    # nn.init.xavier_uniform_ on weight (feature_size, in_channels); bias = 0;
    # BN gamma = 1, beta = 0, running_mean = 0, running_var = 1.
    bound = math.sqrt(6.0 / (in_channels + feature_size))
    w = jax.random.uniform(key, (feature_size, in_channels), dtype=dtype,
                           minval=-bound, maxval=bound)
    return dict(
        w=w,
        b=jnp.zeros((feature_size,), dtype),
        gamma=jnp.ones((feature_size,), dtype),
        beta=jnp.zeros((feature_size,), dtype),
        running_mean=jnp.zeros((feature_size,), dtype),
        running_var=jnp.ones((feature_size,), dtype),
    )


def head_reference_f32(x, params, eps=1e-5):
    # Full-precision plain-JAX reference (dropout identity, linear, eval-mode BN).
    y = x @ params["w"].T + params["b"]
    scale = params["gamma"] / jnp.sqrt(params["running_var"] + eps)
    return (y - params["running_mean"]) * scale + params["beta"]


def head_reference_matched(x, wt_folded, shift_folded, compute_dtype=jnp.bfloat16):
    # Reference mirroring the kernel's compute dtype (bf16 operands, f32 acc).
    y = jnp.dot(x.astype(compute_dtype), wt_folded,
                preferred_element_type=jnp.float32)
    return y + shift_folded


if __name__ == "__main__":
    key = jax.random.PRNGKey(0)
    k_w, k_x, k_m, k_v, k_g, k_b = jax.random.split(key, 6)

    B = 8
    in_channels = 128     # small stand-in for the default 512
    feature_size = 256    # small stand-in for the default 512

    params = init_head_params(k_w, in_channels, feature_size)
    # Non-trivial BN running stats / affine so the weight fold is exercised.
    params["running_mean"] = 0.1 * jax.random.normal(k_m, (feature_size,), jnp.float32)
    params["running_var"] = jax.random.uniform(k_v, (feature_size,), jnp.float32, 0.5, 1.5)
    params["gamma"] = jax.random.uniform(k_g, (feature_size,), jnp.float32, 0.8, 1.2)
    params["beta"] = 0.1 * jax.random.normal(k_b, (feature_size,), jnp.float32)

    x = jax.random.normal(k_x, (B, in_channels), dtype=jnp.float32)

    # Fold Linear bias + eval-mode BN into the weights once (hoisted out of the
    # per-forward path).
    wt_folded, shift_folded = fold_head_params(
        params["w"].T, params["b"], params["gamma"], params["beta"],
        params["running_mean"], params["running_var"])

    out = head_forward(x, wt_folded, shift_folded)
    out = jax.block_until_ready(out)
    assert out.shape == (B, feature_size)

    # Tight check vs. a reference computed in the kernel's compute dtype.
    ref_matched = head_reference_matched(x, wt_folded, shift_folded)
    assert jnp.allclose(out, ref_matched, atol=1e-4, rtol=1e-4), \
        "mismatch vs bf16-matched reference"

    # Loose check vs. the full-f32 reference with realistic BN running stats
    # (bounds the bf16 quantization error of the folded weights).
    ref_f32 = head_reference_f32(x, params)
    assert jnp.allclose(out, ref_f32, atol=5e-2, rtol=5e-2), \
        "mismatch vs f32 reference"

    print("KERNEL_OK")
</pallas_src>

<mosaic_0001>
module attributes {stable_mosaic.version = 11 : i64} {
  func.func @head_kernel(%arg0: i32, %arg1: i32, %arg2: i32, %arg3: memref<8x128xf32, #tpu.memory_space<vmem>>, %arg4: memref<128x128xbf16, #tpu.memory_space<vmem>>, %arg5: memref<1x128xf32, #tpu.memory_space<vmem>>, %arg6: memref<8x128xf32, #tpu.memory_space<vmem>>, %arg7: memref<8x128xf32, #tpu.memory_space<vmem>>) attributes {dimension_semantics = [#tpu.dimension_semantics<parallel>, #tpu.dimension_semantics<parallel>, #tpu.dimension_semantics<arbitrary>], iteration_bounds = array<i64: 1, 2, 1>, scalar_prefetch = 0 : i64, scratch_operands = 1 : i64, tpu.core_type = #tpu.core_type<tc>, window_params = [{transform_indices = @transform_0, window_bounds = array<i64: 8, 128>}, {transform_indices = @transform_1, window_bounds = array<i64: 128, 128>}, {transform_indices = @transform_2, window_bounds = array<i64: 1, 128>}, {transform_indices = @transform_3, window_bounds = array<i64: 8, 128>}]} {
    %c0_i32 = arith.constant 0 : i32
    %0 = arith.cmpi eq, %arg2, %c0_i32 : i32
    %1 = arith.extui %0 : i1 to i32
    %c0_i32_0 = arith.constant 0 : i32
    %2 = arith.cmpi ne, %1, %c0_i32_0 : i32
    scf.if %2 {
      %cst_10 = arith.constant 0.000000e+00 : f32
      %13 = vector.broadcast %cst_10 : f32 to vector<8x128xf32>
      %c0_11 = arith.constant 0 : index
      %c0_12 = arith.constant 0 : index
      %14 = vector.load %arg7[%c0_11, %c0_12] : memref<8x128xf32, #tpu.memory_space<vmem>>, vector<8x128xf32>
      tpu.vector_store %arg7[%c0_11, %c0_12], %13 {strides = array<i32>} : memref<8x128xf32, #tpu.memory_space<vmem>>, vector<8x128xf32>,
    } else {
    }
    %c0 = arith.constant 0 : index
    %c0_1 = arith.constant 0 : index
    %3 = vector.load %arg3[%c0, %c0_1] : memref<8x128xf32, #tpu.memory_space<vmem>>, vector<8x128xf32>
    %4 = arith.truncf %3 : vector<8x128xf32> to vector<8x128xbf16>
    %c0_2 = arith.constant 0 : index
    %c0_3 = arith.constant 0 : index
    %5 = vector.load %arg7[%c0_2, %c0_3] : memref<8x128xf32, #tpu.memory_space<vmem>>, vector<8x128xf32>
    %c0_4 = arith.constant 0 : index
    %c0_5 = arith.constant 0 : index
    %6 = vector.load %arg4[%c0_4, %c0_5] : memref<128x128xbf16, #tpu.memory_space<vmem>>, vector<128x128xbf16>
    %cst = arith.constant dense<0.000000e+00> : vector<8x128xf32>
    %7 = tpu.matmul %4, %6, %cst {dimension_numbers = #tpu.dot_dimension_numbers<[1], [0], [0], [1], [0, 0, 1, 1], [], []>} : vector<8x128xbf16>, vector<128x128xbf16>, vector<8x128xf32> -> vector<8x128xf32>
    %8 = arith.addf %5, %7 : vector<8x128xf32>
    %c0_6 = arith.constant 0 : index
    %c0_7 = arith.constant 0 : index
    %9 = vector.load %arg7[%c0_6, %c0_7] : memref<8x128xf32, #tpu.memory_space<vmem>>, vector<8x128xf32>
    tpu.vector_store %arg7[%c0_6, %c0_7], %8 {strides = array<i32>} : memref<8x128xf32, #tpu.memory_space<vmem>>, vector<8x128xf32>,
    %c0_i32_8 = arith.constant 0 : i32
    %10 = arith.cmpi eq, %arg2, %c0_i32_8 : i32
    %11 = arith.extui %10 : i1 to i32
    %c0_i32_9 = arith.constant 0 : i32
    %12 = arith.cmpi ne, %11, %c0_i32_9 : i32
    scf.if %12 {
      %c0_10 = arith.constant 0 : index
      %c0_11 = arith.constant 0 : index
      %13 = vector.load %arg7[%c0_10, %c0_11] : memref<8x128xf32, #tpu.memory_space<vmem>>, vector<8x128xf32>
      %c0_12 = arith.constant 0 : index
      %c0_13 = arith.constant 0 : index
      %14 = vector.load %arg5[%c0_12, %c0_13] : memref<1x128xf32, #tpu.memory_space<vmem>>, vector<1x128xf32>
      %15 = vector.broadcast %14 : vector<1x128xf32> to vector<8x128xf32>
      %16 = arith.addf %13, %15 : vector<8x128xf32>
      %c0_14 = arith.constant 0 : index
      %c0_15 = arith.constant 0 : index
      %17 = vector.load %arg6[%c0_14, %c0_15] : memref<8x128xf32, #tpu.memory_space<vmem>>, vector<8x128xf32>
      tpu.vector_store %arg6[%c0_14, %c0_15], %16 {strides = array<i32>} : memref<8x128xf32, #tpu.memory_space<vmem>>, vector<8x128xf32>,
    } else {
    }
    return
  }
  func.func @transform_0(%arg0: i32, %arg1: i32, %arg2: i32) -> (i32, i32) {
    %c0_i32 = arith.constant 0 : i32
    return %arg0, %arg2 : i32, i32
  }
  func.func @transform_1(%arg0: i32, %arg1: i32, %arg2: i32) -> (i32, i32) {
    %c0_i32 = arith.constant 0 : i32
    return %arg2, %arg1 : i32, i32
  }
  func.func @transform_2(%arg0: i32, %arg1: i32, %arg2: i32) -> (i32, i32) {
    %c0_i32 = arith.constant 0 : i32
    %c0_i32_0 = arith.constant 0 : i32
    return %c0_i32, %arg1 : i32, i32
  }
  func.func @transform_3(%arg0: i32, %arg1: i32, %arg2: i32) -> (i32, i32) {
    %c0_i32 = arith.constant 0 : i32
    return %arg0, %arg1 : i32, i32
  }
}

</mosaic_0001>

<bundles_post_ra>
// kernel: tpu_custom_call.1
= control target key start
LH: loop header
LB: loop body
LE: loop exit
PB: predicated region body
PF: predicated region fallthrough
CT: control target
= control target key end

     0   :  { %s993_s0 = inlined_call_operand.hbm [shape: f32[8,128], index: 0, kind: input, shape index: {}]   ;;  %s994_s1 = inlined_call_operand.hbm [shape: bf16[128,256], index: 1, kind: input, shape index: {}]   ;;  %s995_s2 = inlined_call_operand.vmem [shape: f32[1,256], index: 2, kind: input, shape index: {}]   ;;  %s996_s3 = inlined_call_operand.hbm [shape: f32[8,256], index: 3, kind: output, shape index: {}]  }
   0x1   :  { %999 = sst [smem:[#allocation12_spill]] %s993_s0 }
   0x2   :  { %8 = vsyncpa [#allocation4], 0 }
   0x3   :  { %9 = vsyncpa [#allocation7], 0 }
   0x4   :  { %11 = vsyncpa [#allocation7 + $0x1], 0 }
   0x5   :  { %12 = vsyncpa [#allocation5], 0 }
   0x6   :  { %14 = vsyncpa [#allocation5 + $0x1], 0  ;;  %s812_s12 = smov 0   ;;  %s814_s13 = smov 0  }
   0x7   :  { %s816_s14 = smov 0   ;;  %s818_s15 = smov 0  }
   0x8   :  { %s820_s16 = smov 0   ;;  %s822_s17 = smov 0  }
   0x9 LB: > { %s505_s18 = sadd.s32 4294967295, %s782_s17   ;;  %s506_s19 = sadd.s32 4294967294, %s782_s17   ;;  %s782_s17 = sphi %s822_s17, %s20_s17   ;;  %s778_s16 = sphi %s820_s16, %s1017_s16   ;;  %s774_s15 = sphi %s818_s15, %s1016_s15   ;;  %s770_s14 = sphi %s816_s14, %s1015_s14   ;;  %s766_s13 = sphi %s814_s13, %s1014_s13   ;;  %s762_s12 = sphi %s812_s12, %s1013_s12  }
   0xa   : > { %s76_s20 = sadd.s32 1, %s770_s14  ;;  %p83_p0 = scmp.ne.s32.totalorder %s770_s14, %s766_s13 }
   0xb   : > { %p84_p1 = scmp.eq.s32.totalorder %s782_s17, 0  ;;  %p89_p2 = scmp.ne.s32.totalorder %s766_s13, %s762_s12 }
   0xc   : > { %p850_p3 = scmp.eq.s32.totalorder %s505_s18, 0  ;;  %p141_p4 = scmp.eq.s32.totalorder %s505_s18, 1 }
   0xd   : > { %p854_p5 = por %p84_p1, %p83_p0  ;;  %p147_p6 = scmp.eq.s32.totalorder %s506_s19, 1 }
   0xe   : > { %p860_p7 = por %p850_p3, %p89_p2  ;;  %p864_p8 = por %p141_p4, %p83_p0 }
   0xf   : > { %p868_p9 = por %p147_p6, %p89_p2  ;;  %p507_p10 = scmp.ge.s32.totalorder %s782_s17, 1 }
  0x10   : > { %s1002_s23 = scalar_select %p860_p7, 1, 0 }
  0x11   : > { %s1003_s24 = scalar_select %p864_p8, 1, 0 }
  0x12   : > { %s1004_s25 = scalar_select %p868_p9, 1, 0 }
  0x13   : > { %p154_p11 = scmp.lt.s32.totalorder %s782_s17, 3  ;;  %s784_s27 = smov [#allocation3]  }
  0x14   : > { %s170_s28 = sshll.u32 %s784_s27, 4  ;;  %p579_p1 = scmp.lt.s32.totalorder %s782_s17, 2  ;;  %s171_s28 = int_to_ptr.vmem [resolvable:$true] %s170_s28 }
  0x15   : > { %p875_p13 = pnand %p507_p10, %p154_p11  ;;  %s35_s4 = sadd.s32 1, %s778_s16 }
  0x16   : > { %p884_p4 = pnand %p579_p1, %p854_p5  ;;  %p37_p6 = scmp.ge.s32.totalorder %s35_s4, 2 }
  0x17   : > { %p566_p0 = pneg %p875_p13  ;;  %s181_s5 = sand.u32 1, %s770_s14  }
  0x18   : > { %s655_s6 = scalar_lea.vmem %s171_s28, 128  ;;  %p663_p8 = scmp.lt.s32.totalorder %s171_s28, %s171_s28 }
  0x19   : > { %p890_p2 = pnand %p566_p0, %p850_p3  ;;  %p656_p11 = scmp.ne.s32.totalorder %s171_s28, %s655_s6 }
  0x1a   : > { %p664_p5 = scmp.lt.s32.totalorder %s655_s6, %s655_s6 }
  0x1b   : > { %p646_p10 = pneg %p890_p2 }
  0x1c   : > { %p665_p1 = por %p664_p5, %p663_p8 }
  0x1d   : > { %p658_p12 = pnand %p656_p11, %p646_p10 }
  0x1f   : > { %p659_p9 = pneg %p658_p12 }
  0x21   : > { %p666_p7 = pnand %p665_p1, %p659_p9 }
  0x23   : > { %669 = shalt.err (!%p666_p7)
}
  0x24   : > { %s1008_s0 = sld [smem:[#allocation12_spill]]  ;;  %s1019_s4 = smov (%p37_p6, %s35_s4), 0 }
  0x25   : > { %s510_s9 = sshll.u32 %s181_s5, 6  ;;  %s72_s10 = ssub.s32 %s778_s16, %s1019_s4 }
  0x26   : > { %p74_p12 = scmp.eq.s32.totalorder %s72_s10, 0  ;;  %s511_s11 = sshll.u32 %s778_s16, 6 }
  0x27   : > { %s193_s22 = scalar_lea.hbm %s994_s1, %s511_s11  ;;  %s185_s27 = scalar_lea.vmem [#allocation6], %s510_s9 }
  0x28   : > { %s194_s30 = sshll.u32 %s185_s27, 4  ;;  %s182_s7 = scalar_lea.sflag [#allocation7], %s181_s5  ;;  %s195_s30 = int_to_ptr.vmem [resolvable:$true] %s194_s30 }
  0x29   : > { %s914_s6 = scalar_select %p74_p12, %s770_s14, %s76_s20  }
  0x2a   : > { %569 = dma.hbm_to_vmem [thread:$0]  (!%p890_p2), %s1008_s0, 128, %s171_s28, [#allocation4]  }
  0x2b   : > { %p672_p7 = pneg %p884_p4  ;;  %s683_s28 = scalar_lea.vmem %s195_s30, 1024 }
  0x2c   : > { %p684_p8 = scmp.ne.s32.totalorder %s195_s30, %s683_s28  ;;  %s785_s8 = smov [#allocation6]  }
  0x2d   : > { %s688_s10 = sshll.u32 %s785_s8, 4  ;;  %s689_s10 = int_to_ptr.vmem [resolvable:$false] %s688_s10 }
  0x2e   : > { %p686_p9 = pnand %p684_p8, %p672_p7  ;;  %s690_s0 = scalar_lea.vmem %s689_s10, 2048 }
  0x2f   : > { %p691_p2 = scmp.lt.s32.totalorder %s195_s30, %s689_s10  ;;  %p692_p6 = scmp.lt.s32.totalorder %s690_s0, %s683_s28 }
  0x30   : > { %p687_p0 = pneg %p686_p9 }
  0x31   : > { %p693_p10 = por %p692_p6, %p691_p2 }
  0x33   : > { %p694_p11 = pnand %p693_p10, %p687_p0 }
  0x35   : > { %697 = shalt.err (!%p694_p11)
}
  0x36   : > { %s786_s9 = smov 128   ;;  %s787_s20 = smov 64  }
  0x37   : > { %s788_s11 = smov 4   ;;  %212 = sbr.rel (%p875_p13) target bundleno = 307 (0x133), region = 32 }
  0x38   : > { %573 = dma.hbm_to_vmem [thread:$0]  (!%p884_p4), %s193_s22, 1024, %s195_s30, %s182_s7, %s786_s9, %s787_s20, %s788_s11  }
  0x3c   : > { %749 = dma.done.wait (%p850_p3), [#allocation4], 128  }
  0x3d   : > { %751 = vsyncadd (%p850_p3), [#allocation4], 4294967168  ;;  %s927_s0 = sand.u32 1, %s766_s13   ;;  %p1009_p5 = scmp.ne.s32.totalorder %s1002_s23, 0 }
  0x3e   : > { %s514_s5 = sshll.u32 %s927_s0, 6  ;;  %s219_s18 = scalar_lea.sflag [#allocation7], %s927_s0 }
  0x3f   : > { %s222_s19 = scalar_lea.vmem [#allocation6], %s514_s5 }
  0x40   : > { %753 = dma.done.wait (%p1009_p5), %s219_s18, 1024  }
  0x41   : > { %755 = vsyncadd (%p1009_p5), %s219_s18, 4294966272  ;;  %v789_v0 = vmov 0.0   ;;  %vm790_vm0 = vmmov 0   ;;  %v636_v1 = vld [vmem:[%s222_s19 + $0x38] sm:$0xff]   ;;  %v637_v2 = vld [vmem:[%s222_s19 + $0x30] sm:$0xff]   ;;  %p249_p3 = scmp.lt.s32.totalorder %s774_s15, 1 }
  0x42   : > { %538 = vmatprep.subr.bf16.mxu0 %v789_v0  ;;  %554 = vmatprep.mubr.msk.bf16.mxu0 %vm790_vm0, %v789_v0  ;;  %v638_v3 = vld [vmem:[%s222_s19 + $0x28] sm:$0xff]   ;;  %v639_v4 = vld [vmem:[%s222_s19 + $0x20] sm:$0xff]   ;;  %v640_v5 = vld [vmem:[%s222_s19 + $0x18] sm:$0xff]   ;;  %s515_s23 = sshll.u32 %s927_s0, 3  ;;  %s526_s27 = sshll.u32 %s774_s15, 7 }
  0x43   : > { %539 = vmatpush3.bf16.msra.mxu0 %v636_v1  ;;  %v641_v6 = vld [vmem:[%s222_s19 + $0x10] sm:$0xff]   ;;  %v642_v7 = vld [vmem:[%s222_s19 + $0x8] sm:$0xff]   ;;  %v643_v8 = vld [vmem:[%s222_s19] sm:$0xff]   ;;  %s250_s21 = scalar_select %p249_p3, %s774_s15, 1 }
  0x44   : > { %540 = vmatprep.subr.bf16.mxu0 %v789_v0  ;;  %v258_v9 = vld [vmem:[#allocation3] sm:$0xff]  ;;  %s247_s30 = scalar_lea.vmem [#allocation8], %s515_s23  ;;  %s945_s10 = scalar_lea.hbm %s996_s3, %s526_s27 }
  0x45   : > { %v259_v10 = vpack.c.bf16 %v258_v9, %v258_v9  ;;  %s251_s22 = scalar_lea.vmem %s995_s2, %s250_s21  ;;  %s396_s7 = sshll.u32 %s247_s30, 4  ;;  %s947_s7 = int_to_ptr.vmem [resolvable:$true] %s396_s7 }
  0x46   : > { %v524_v11 = vld [vmem:[%s251_s22] ss:$0 sm:$0xff]  ;;  %s381_s9 = scalar_lea.sflag [#allocation5], %s927_s0  ;;  %s698_s20 = scalar_lea.vmem %s947_s7, 128 }
  0x47   : > { %541 = vmatpush3.bf16.msra.mxu0 %v637_v2  ;;  %p699_p13 = scmp.ne.s32.totalorder %s947_s7, %s698_s20  ;;  %p1010_p4 = scmp.ne.s32.totalorder %s1003_s24, 0 }
  0x48   : > { %542 = vmatprep.subr.bf16.mxu0 %v789_v0  ;;  %s791_s15 = smov [#allocation8]  }
  0x49   : > { %p700_p1 = pnand %p699_p13, %p1010_p4  ;;  %s702_s11 = sshll.u32 %s791_s15, 4  ;;  %s703_s11 = int_to_ptr.vmem [resolvable:$false] %s702_s11 }
  0x4a   : > { %s704_s5 = scalar_lea.vmem %s703_s11, 256  ;;  %p705_p7 = scmp.lt.s32.totalorder %s947_s7, %s703_s11 }
  0x4b   : > { %543 = vmatpush3.bf16.msra.mxu0 %v638_v3  ;;  %p701_p12 = pneg %p700_p1  ;;  %p706_p8 = scmp.lt.s32.totalorder %s704_s5, %s698_s20 }
  0x4c   : > { %544 = vmatprep.subr.bf16.mxu0 %v789_v0 }
  0x4d   : > { %p707_p9 = por %p706_p8, %p705_p7 }
  0x4f   : > { %545 = vmatpush3.bf16.msra.mxu0 %v639_v4  ;;  %p708_p0 = pnand %p707_p9, %p701_p12 }
  0x50   : > { %546 = vmatprep.subr.bf16.mxu0 %v789_v0 }
  0x53   : > { %547 = vmatpush3.bf16.msra.mxu0 %v640_v5 }
  0x54   : > { %548 = vmatprep.subr.bf16.mxu0 %v789_v0 }
  0x57   : > { %549 = vmatpush3.bf16.msra.mxu0 %v641_v6 }
  0x58   : > { %550 = vmatprep.subr.bf16.mxu0 %v789_v0 }
  0x5b   : > { %551 = vmatpush3.bf16.msra.mxu0 %v642_v7 }
  0x5c   : > { %552 = vmatprep.subr.bf16.mxu0 %v789_v0 }
  0x5f   : > { %553 = vmatpush3.bf16.msra.mxu0 %v643_v8 }
  0x62   : > { %555 = vmatmul.mubr.bf16.vlgmr.msra.gmra.mxu0 %v259_v10 }
 0x122   : > { %v359_v12 = vpop.f32.mrf.mxu0 }
 0x123   : > { %v378_v13 = vadd.f32 %v524_v11, %v359_v12 }
 0x124   : > { %v556_v14 = vpop.f32.mrf.mxu0 }
 0x125   : > { %379 = vst [vmem:[%s247_s30] sm:$0xff] %v378_v13 }
 0x126   : > { %v362_v15 = vpop.f32.mrf.mxu0 }
 0x127   : > { %711 = shalt.err (!%p708_p0)
}
 0x128   : > { %s712_s18 = scalar_lea.hbm %s945_s10, 128  ;;  %s716_s21 = scalar_lea.hbm %s996_s3, 256 }
 0x129   : > { %p713_p2 = scmp.ne.s32.totalorder %s945_s10, %s712_s18  ;;  %p717_p11 = scmp.lt.s32.totalorder %s945_s10, %s996_s3 }
 0x12a   : > { %p718_p5 = scmp.lt.s32.totalorder %s716_s21, %s712_s18 }
 0x12b   : > { %p714_p6 = pnand %p713_p2, %p1010_p4 }
 0x12c   : > { %p719_p3 = por %p718_p5, %p717_p11 }
 0x12d   : > { %p715_p10 = pneg %p714_p6 }
 0x12f   : > { %p720_p13 = pnand %p719_p3, %p715_p10 }
 0x131   : > { %723 = shalt.err (!%p720_p13)
}
 0x132   : > { %564 = dma.vmem_to_hbm [thread:$0]  (%p1010_p4), %s947_s7, 128, %s945_s10, %s381_s9   ;;  %v557_v16 = vpop.f32.mrf.mxu0 }
 0x133 PF: > { %s408_s29 = sand.u32 1, %s762_s12   ;;  %p1011_p1 = scmp.ne.s32.totalorder %s1004_s25, 0 }
 0x134   : > { %p1012_p12 = scmp.ge.s32.totalorder %s782_s17, 2  ;;  %s409_s22 = scalar_lea.sflag [#allocation5], %s408_s29 }
 0x136   : > { %p575_p7 = pnand %p1012_p12, %p1011_p1 }
 0x138   : > { %p576_p8 = pneg %p575_p7 }
 0x13a   : > { %757 = dma.done.wait (%p576_p8), %s409_s22, 128  }
 0x13b   : > { %759 = vsyncadd (%p576_p8), %s409_s22, 4294967168  ;;  %s20_s17 = sadd.s32 1, %s782_s17   ;;  %s1013_s12 = smov %s766_s13 }
 0x13c   : > { %p17_p9 = scmp.ge.s32.totalorder %s20_s17, 4   ;;  %s1014_s13 = smov %s770_s14 }
 0x13d   : > { %s1015_s14 = smov %s914_s6  ;;  %s1016_s15 = smov %s778_s16 }
 0x13e   : > { %s1017_s16 = smov %s1019_s4  ;;  %19 = sbr.rel (!%p17_p9) target bundleno = 9 (0x9), region = 94 }
 0x143   :  { %414 = vsyncpa [#allocation4], 1 }
 0x144   :  { %416 = vsyncpa [#allocation4 + $0x1], 1 }
 0x145   :  { %417 = vsyncpa [#allocation7], 1 }
 0x146   :  { %419 = vsyncpa [#allocation7 + $0x1], 1 }
 0x147   :  { %420 = vsyncpa [#allocation5], 1 }
 0x148   :  { %422 = vsyncpa [#allocation5 + $0x1], 1 }

</bundles_post_ra>
